<compile_context>
chip_gen: v6e
topology: v6e:2x2x1
jax: 0.10.0
libtpu: 0.0.40
codegen_flags: <defaults>
</compile_context>

<pallas_src>
import functools

import jax
import jax.numpy as jnp
from jax.experimental import pallas as pl
from jax.experimental.pallas import tpu as pltpu

KSIZE = 3          # nn.MaxPool2d(kernel_size=3) -> stride defaults to 3, padding=0
_LANE = 128


def _maxpool_kernel(x_ref, o_ref, *, h_total):
    """3x3 / stride-3 max pool of one block.

    x_ref: (nc_t, hb, w)   input planes (W on lanes, H on sublanes, planes leading)
    o_ref: (nc_t, ho_b, wo) pooled output
    """
    nc_t, hb, w = x_ref.shape
    _, ho_b, wo = o_ref.shape
    f32 = jnp.float32

    # Exact one-hot "gather" matrices (0/1 values), built once per grid step.
    #   sel_c[c, j] = 1 iff c == 3j  -> compacts pooled columns (lane 3j -> lane j)
    #   sel_r[i, r] = 1 iff r == 3i  -> compacts pooled rows    (row  3i -> row  i)
    ci = jax.lax.broadcasted_iota(jnp.int32, (w - 2, wo), 0)
    cj = jax.lax.broadcasted_iota(jnp.int32, (w - 2, wo), 1)
    sel_c = (ci == KSIZE * cj).astype(f32)
    ri = jax.lax.broadcasted_iota(jnp.int32, (ho_b, hb - 2), 0)
    rj = jax.lax.broadcasted_iota(jnp.int32, (ho_b, hb - 2), 1)
    sel_r = (rj == KSIZE * ri).astype(f32)

    # Rows of this block that hold real HBM data.  The last H/NC block can be padded with
    # uninitialized VMEM; zero those rows so 0 * NaN/Inf cannot leak into valid outputs.
    n_real_rows = h_total - pl.program_id(1) * hb
    row_ids = jax.lax.broadcasted_iota(jnp.int32, (hb, wo), 0)
    real_row = row_ids < n_real_rows
    # TODO(synk): inputs that carry +/-inf or NaN in rows/cols the floor-mode window never
    # reads could still leak NaN through the 0-weighted matmul terms; finite inputs
    # (the normal case) are exact.

    def body(p, carry):
        x = x_ref[p]                                                       # (hb, w)
        # 1) 3-tap column max: unit-stride lane-shifted slices + 2 VPU maxes.
        #    (valid pooled value sits at lane 3j)
        mc = jnp.maximum(jnp.maximum(x[:, 0:w - 2], x[:, 1:w - 1]), x[:, 2:w])
        # 2) compact columns on the MXU (exact one-hot gather)          -> (hb, wo)
        tc = jnp.dot(mc.astype(f32), sel_c,
                     precision=jax.lax.Precision.HIGHEST,
                     preferred_element_type=f32)
        tc = jnp.where(real_row, tc, 0.0)
        # 3) 3-tap row max on the narrow (wo-wide) data (valid at row 3i) -> (hb-2, wo)
        mr = jnp.maximum(jnp.maximum(tc[0:hb - 2, :], tc[1:hb - 1, :]), tc[2:hb, :])
        # 4) compact rows on the MXU                                      -> (ho_b, wo)
        out_p = jnp.dot(sel_r, mr,
                        precision=jax.lax.Precision.HIGHEST,
                        preferred_element_type=f32)
        o_ref[p] = out_p.astype(o_ref.dtype)
        return carry

    jax.lax.fori_loop(0, nc_t, body, 0)


def _cdiv(a, b):
    return -(-a // b)


def _pad_to(n, m):
    return _cdiv(n, m) * m


def _sublane(dtype):
    # sublane packing: 8 rows for 4-byte, 16 for 2-byte, 32 for 1-byte dtypes
    return max(8, 32 // max(jnp.dtype(dtype).itemsize, 1))


def _choose_tiling(nc, h, w, ho, wo, dtype):
    """Pick (nc_tile, grid_nc, ho_tile, hb, grid_h) from (8,128)-padded VMEM accounting."""
    item = jnp.dtype(dtype).itemsize
    sub = _sublane(dtype)
    lane_w = _pad_to(w, _LANE)
    lane_wo = _pad_to(wo, _LANE)

    PLANE_CAP = 2 * 1024 * 1024        # per-plane input slab cap (bounds in-kernel temps)
    BLOCK_BUDGET = 16 * 1024 * 1024    # double-buffered (in + out) block budget
    MIN_BLOCK = 256 * 1024             # never shrink blocks below this for parallelism
    TARGET_STEPS = 4                   # give v7x's two TensorCores work to balance

    # --- H tiling: only when a whole plane would exceed the per-plane cap ------------
    full_plane = _pad_to(h, sub) * lane_w * item
    if full_plane <= PLANE_CAP or ho <= 8:
        ho_tile, hb, grid_h = ho, h, 1
    else:
        ho_tile = max(8, (ho // 8) * 8)      # multiple of 8 so blocks tile (8,128)
        while ho_tile > 8 and _pad_to(KSIZE * ho_tile, sub) * lane_w * item > PLANE_CAP:
            ho_tile -= 8
        hb = KSIZE * ho_tile
        grid_h = _cdiv(ho, ho_tile)

    # --- plane (N*C) tiling with padded block sizes -----------------------------------
    in_slab = _pad_to(hb, sub) * lane_w * item
    out_slab = _pad_to(ho_tile, sub) * lane_wo * item
    per_plane = in_slab + out_slab
    nc_tile = max(1, min(nc, BLOCK_BUDGET // (2 * per_plane)))
    # keep >= TARGET_STEPS parallel grid steps (dual-TC balance) without tiny blocks
    while (_cdiv(nc, nc_tile) * grid_h < TARGET_STEPS and nc_tile > 1
           and (nc_tile // 2) * per_plane >= MIN_BLOCK):
        nc_tile = nc_tile // 2
    grid_nc = _cdiv(nc, nc_tile)
    return nc_tile, grid_nc, ho_tile, hb, grid_h


def maxpool2d_k3(x_nchw):
    """Forward pass of SJM: MaxPool2d(kernel_size=3, ceil_mode=False) on NCHW input."""
    n, c, h, w = x_nchw.shape
    assert h >= KSIZE and w >= KSIZE, "spatial dims must be >= kernel size"
    ho = (h - KSIZE) // KSIZE + 1      # floor mode (ceil_mode=False)
    wo = (w - KSIZE) // KSIZE + 1

    nc = n * c
    x_flat = x_nchw.reshape(nc, h, w)  # free: merge contiguous leading dims, no transpose

    nc_tile, grid_nc, ho_tile, hb, grid_h = _choose_tiling(nc, h, w, ho, wo, x_nchw.dtype)

    item = jnp.dtype(x_nchw.dtype).itemsize
    cost = pl.CostEstimate(
        flops=8 * nc * ho * wo,                              # ~8 compares per pooled output
        transcendentals=0,
        bytes_accessed=nc * h * w * item + nc * ho * wo * item,
    )

    out_flat = pl.pallas_call(
        functools.partial(_maxpool_kernel, h_total=h),
        out_shape=jax.ShapeDtypeStruct((nc, ho, wo), x_nchw.dtype),
        grid_spec=pltpu.PrefetchScalarGridSpec(
            num_scalar_prefetch=0,
            grid=(grid_nc, grid_h),
            in_specs=[
                # last two block dims are full-W and either full-H or a multiple of 8
                pl.BlockSpec((nc_tile, hb, w), lambda i, j: (i, j, 0)),
            ],
            out_specs=pl.BlockSpec((nc_tile, ho_tile, wo), lambda i, j: (i, j, 0)),
        ),
        compiler_params=pltpu.CompilerParams(
            dimension_semantics=("parallel", "parallel"),
            vmem_limit_bytes=32 * 1024 * 1024,
        ),
        cost_estimate=cost,
    )(x_flat)

    return out_flat.reshape(n, c, ho, wo)  # free reshape back to NCHW output


if __name__ == "__main__":
    # SJM has no learnable parameters (MaxPool2d only), so nothing to initialize.
    key = jax.random.PRNGKey(0)
    x = jax.random.normal(key, (2, 4, 16, 16), dtype=jnp.float32)  # NCHW like PyTorch

    out = maxpool2d_k3(x)
    out = jax.block_until_ready(out)

    # sanity check against a pure-JAX reference (floor mode, VALID padding)
    ref = jax.lax.reduce_window(
        x, -jnp.inf, jax.lax.max,
        window_dimensions=(1, 1, KSIZE, KSIZE),
        window_strides=(1, 1, KSIZE, KSIZE),
        padding="VALID",
    )
    assert out.shape == (2, 4, 5, 5), out.shape
    # The max itself is exact; the one-hot gather matmuls run at Precision.HIGHEST so the
    # result should match bit-for-bit -- the tolerance is only slack for MXU pass rounding.
    assert jnp.allclose(out, ref, rtol=1e-2, atol=1e-2), "Pallas maxpool mismatch vs reference"

    print("KERNEL_OK")
</pallas_src>

<mosaic_0001>
module attributes {stable_mosaic.version = 11 : i64} {
  func.func @_maxpool_kernel(%arg0: i32, %arg1: i32, %arg2: memref<8x16x16xf32, #tpu.memory_space<vmem>>, %arg3: memref<8x5x5xf32, #tpu.memory_space<vmem>>) attributes {dimension_semantics = [#tpu.dimension_semantics<parallel>, #tpu.dimension_semantics<parallel>], iteration_bounds = array<i64: 1, 1>, scalar_prefetch = 0 : i64, scratch_operands = 0 : i64, tpu.core_type = #tpu.core_type<tc>, window_params = [{transform_indices = @transform_0, window_bounds = array<i64: 8, 16, 16>}, {transform_indices = @transform_1, window_bounds = array<i64: 8, 5, 5>}]} {
    %0 = tpu.iota {dimensions = array<i32: 0>} : vector<14x5xi32>
    %1 = tpu.iota {dimensions = array<i32: 1>} : vector<14x5xi32>
    %c3_i32 = arith.constant 3 : i32
    %2 = vector.broadcast %c3_i32 : i32 to vector<14x5xi32>
    %3 = arith.muli %2, %1 : vector<14x5xi32>
    %4 = arith.cmpi eq, %0, %3 : vector<14x5xi32>
    %5 = arith.extui %4 : vector<14x5xi1> to vector<14x5xi32>
    %6 = arith.sitofp %5 : vector<14x5xi32> to vector<14x5xf32>
    %7 = tpu.iota {dimensions = array<i32: 0>} : vector<5x14xi32>
    %8 = tpu.iota {dimensions = array<i32: 1>} : vector<5x14xi32>
    %c3_i32_0 = arith.constant 3 : i32
    %9 = vector.broadcast %c3_i32_0 : i32 to vector<5x14xi32>
    %10 = arith.muli %9, %7 : vector<5x14xi32>
    %11 = arith.cmpi eq, %8, %10 : vector<5x14xi32>
    %12 = arith.extui %11 : vector<5x14xi1> to vector<5x14xi32>
    %13 = arith.sitofp %12 : vector<5x14xi32> to vector<5x14xf32>
    %c16_i32 = arith.constant 16 : i32
    %14 = arith.muli %arg1, %c16_i32 : i32
    %c16_i32_1 = arith.constant 16 : i32
    %15 = arith.subi %c16_i32_1, %14 : i32
    %16 = tpu.iota {dimensions = array<i32: 0>} : vector<16x5xi32>
    %17 = vector.broadcast %15 : i32 to vector<16x5xi32>
    %18 = arith.cmpi slt, %16, %17 : vector<16x5xi32>
    %c0_i32 = arith.constant 0 : i32
    %c8_i32 = arith.constant 8 : i32
    %19 = arith.addi %c0_i32, %c8_i32 : i32
    %c1_i32 = arith.constant 1 : i32
    scf.for %arg4 = %c0_i32 to %19 step %c1_i32  : i32 {
      %20 = arith.index_cast %arg4 : i32 to index
      %c0 = arith.constant 0 : index
      %c0_3 = arith.constant 0 : index
      %21 = vector.load %arg2[%20, %c0, %c0_3] : memref<8x16x16xf32, #tpu.memory_space<vmem>>, vector<1x16x16xf32>
      %22 = vector.shape_cast %21 : vector<1x16x16xf32> to vector<16x16xf32>
      %23 = vector.extract_strided_slice %22 {offsets = [0, 0], sizes = [16, 14], strides = [1, 1]} : vector<16x16xf32> to vector<16x14xf32>
      %24 = vector.extract_strided_slice %22 {offsets = [0, 1], sizes = [16, 14], strides = [1, 1]} : vector<16x16xf32> to vector<16x14xf32>
      %25 = arith.maximumf %23, %24 : vector<16x14xf32>
      %26 = vector.extract_strided_slice %22 {offsets = [0, 2], sizes = [16, 14], strides = [1, 1]} : vector<16x16xf32> to vector<16x14xf32>
      %27 = arith.maximumf %25, %26 : vector<16x14xf32>
      %cst = arith.constant dense<0.000000e+00> : vector<16x5xf32>
      %28 = tpu.matmul %27, %6, %cst {dimension_numbers = #tpu.dot_dimension_numbers<[1], [0], [0], [1], [0, 0, 1, 1], [], []>, precision = #tpu.contract_precision<fp32>} : vector<16x14xf32>, vector<14x5xf32>, vector<16x5xf32> -> vector<16x5xf32>
      %cst_4 = arith.constant 0.000000e+00 : f32
      %29 = vector.broadcast %cst_4 : f32 to vector<16x5xf32>
      %30 = arith.select %18, %28, %29 : vector<16x5xi1>, vector<16x5xf32>
      %31 = vector.extract_strided_slice %30 {offsets = [0, 0], sizes = [14, 5], strides = [1, 1]} : vector<16x5xf32> to vector<14x5xf32>
      %32 = vector.extract_strided_slice %30 {offsets = [1, 0], sizes = [14, 5], strides = [1, 1]} : vector<16x5xf32> to vector<14x5xf32>
      %33 = arith.maximumf %31, %32 : vector<14x5xf32>
      %34 = vector.extract_strided_slice %30 {offsets = [2, 0], sizes = [14, 5], strides = [1, 1]} : vector<16x5xf32> to vector<14x5xf32>
      %35 = arith.maximumf %33, %34 : vector<14x5xf32>
      %cst_5 = arith.constant dense<0.000000e+00> : vector<5x5xf32>
      %36 = tpu.matmul %13, %35, %cst_5 {dimension_numbers = #tpu.dot_dimension_numbers<[1], [0], [0], [1], [0, 0, 1, 1], [], []>, precision = #tpu.contract_precision<fp32>} : vector<5x14xf32>, vector<14x5xf32>, vector<5x5xf32> -> vector<5x5xf32>
      %37 = arith.index_cast %arg4 : i32 to index
      %c0_6 = arith.constant 0 : index
      %c0_7 = arith.constant 0 : index
      %38 = vector.load %arg3[%37, %c0_6, %c0_7] : memref<8x5x5xf32, #tpu.memory_space<vmem>>, vector<1x5x5xf32>
      %39 = vector.shape_cast %38 : vector<1x5x5xf32> to vector<5x5xf32>
      %40 = vector.shape_cast %36 : vector<5x5xf32> to vector<1x5x5xf32>
      tpu.vector_store %arg3[%37, %c0_6, %c0_7], %40 {strides = array<i32>} : memref<8x5x5xf32, #tpu.memory_space<vmem>>, vector<1x5x5xf32>,
    }
    %c8_i32_2 = arith.constant 8 : i32
    return
  }
  func.func @transform_0(%arg0: i32, %arg1: i32) -> (i32, i32, i32) {
    %c0_i32 = arith.constant 0 : i32
    %c0_i32_0 = arith.constant 0 : i32
    return %arg0, %arg1, %c0_i32 : i32, i32, i32
  }
  func.func @transform_1(%arg0: i32, %arg1: i32) -> (i32, i32, i32) {
    %c0_i32 = arith.constant 0 : i32
    %c0_i32_0 = arith.constant 0 : i32
    return %arg0, %arg1, %c0_i32 : i32, i32, i32
  }
}

</mosaic_0001>

<bundles_post_ra>
// kernel: tpu_custom_call.1
= control target key start
LH: loop header
LB: loop body
LE: loop exit
PB: predicated region body
PF: predicated region fallthrough
CT: control target
= control target key end

     0   :  { %6 = vsyncpa [#allocation3], 0  ;;  %s1273_s6 = smov [#allocation2]   ;;  %s1395_s0 = inlined_call_operand.hbm [shape: f32[8,16,16], index: 0, kind: input, shape index: {}]   ;;  %s1396_s1 = inlined_call_operand.vmem [shape: f32[8,5,5], index: 1, kind: output, shape index: {}]  }
   0x1   :  { %s12_s7 = sshll.u32 %s1273_s6, 4  ;;  %s13_s7 = int_to_ptr.vmem [resolvable:$true] %s12_s7 }
   0x2   :  { %s1251_s8 = scalar_lea.vmem %s13_s7, 2048  ;;  %p1256_p1 = scmp.lt.s32.totalorder %s13_s7, %s13_s7 }
   0x3   :  { %p1252_p0 = scmp.ne.s32.totalorder %s13_s7, %s1251_s8  ;;  %p1257_p2 = scmp.lt.s32.totalorder %s1251_s8, %s1251_s8 }
   0x5   :  { %p1258_p3 = por %p1257_p2, %p1256_p1 }
   0x7   :  { %p1259_p4 = pnand %p1258_p3, %p1252_p0 }
   0x9   :  { %1262 = shalt.err (!%p1259_p4)
}
   0xa   :  { %s1274_s9 = smov 128   ;;  %s1275_s10 = smov 8  }
   0xb   :  { %18 = dma.hbm_to_vmem [thread:$0]  %s1395_s0, 2048, %s13_s7, [#allocation3], %s1274_s9, %s1274_s9, %s1275_s10  }
   0xc   :  { %1267 = dma.done.wait [#allocation3], 2048  }
   0xd   :  { %1268 = vsyncadd [#allocation3], 4294965248  ;;  %v22_v0 = vlaneseq  ;;  %v1276_v7 = vmov 0.0   ;;  %s1307_s0 = smov 0  }
   0xf   :  { %v23_v1 = vshrl.u32 %v22_v0, 7  ;;  %v26_v2 = vand.u32 127, %v22_v0 }
  0x11   :  { %v24_v3 = vadd.s32 8, %v23_v1  ;;  %v27_v4 = vmul.u32 3, %v26_v2  ;;  %v34_v5 = vmul.u32 3, %v23_v1 }
  0x13   :  { %vm1295_vm0 = vcmp.eq.s32.totalorder %v23_v1, %v27_v4  ;;  %vm29_vm1 = vcmp.eq.s32.totalorder %v24_v3, %v27_v4  ;;  %vm35_vm2 = vcmp.eq.s32.totalorder %v26_v2, %v34_v5 }
  0x14   :  { %v1301_v8 = vsel %vm1295_vm0, 1.0, %v1276_v7  ;;  %v1303_v9 = vsel %vm29_vm1, 1.0, %v1276_v7  ;;  %v1305_v10 = vsel %vm35_vm2, 1.0, %v1276_v7 }
  0x15 LB: > { %vm78_vm3 = vcmask 1045504   ;;  %v1314_v11 = vsub.f32 %v1301_v8, %v1301_v8  ;;  %s1089_s13 = sshll.u32 %s1271_s0, 4  ;;  %s1277_s15 = smov 127   ;;  %v1279_v20 = vmov 1.0   ;;  %vm71_vm4 = vcmask 113664   ;;  %s1271_s0 = sphi %s1307_s0, %s48_s0  }
  0x16   : > { %v80_v12 = vsel %vm78_vm3, %v1303_v9, 0  ;;  %1142 = vmatprep.subr.msk.mxu0 %vm78_vm3, %v1303_v9  ;;  %s50_s14 = scalar_lea.vmem [#allocation2], %s1089_s13  ;;  %s1278_s16 = smov 126   ;;  %v1280_v43 = vmov 0.0   ;;  %vm1281_vm5 = vmmov 0   ;;  %v604_v55 = vsel %vm71_vm4, %v1305_v10, 0 }
  0x17   : > { %v199_v13 = vsub.f32 %v80_v12, %v80_v12  ;;  %v1322_v14 = vand.u32 4294901760, %v1314_v11  ;;  %1143 = vmatpush3.msk.msra.mxu0 %vm78_vm3, %v1303_v9  ;;  %v51_v15 = vld [vmem:[%s50_s14] sm:$0xff]  ;;  %v52_v18 = vld [vmem:[%s50_s14 + $0x8] sm:$0xff]  ;;  %v677_v62 = vsub.f32 %v604_v55, %v604_v55  ;;  %vm588_vm6 = vcmask 1046528   ;;  %s1099_s17 = sshll.u32 %s1271_s0, 3  ;;  %s48_s0 = sadd.s32 1, %s1271_s0  }
  0x18   : > { %55 = vrot.lane.b32.xlu0 %v51_v15, %s1277_s15  ;;  %63 = vrot.lane.b32.xlu1 %v51_v15, %s1278_s16  ;;  %s1069_s20 = scalar_lea.vmem %s1396_s1, %s1099_s17  ;;  %vm1070_vm7 = vcmask 36864   ;;  %p45_p5 = scmp.ge.s32.totalorder %s48_s0, 8  }
  0x19   : > { %v200_v16 = vand.u32 4294901760, %v199_v13  ;;  %v208_v17 = vsub.f32 %v1314_v11, %v1322_v14  ;;  %1144 = vmatprep.subr.msk.mxu0 %vm1295_vm0, %v1279_v20  ;;  %v678_v5 = vand.u32 4294901760, %v677_v62 }
  0x1a   : > { %1145 = vmatpush3.msk.msra.mxu0 %vm1295_vm0, %v1279_v20 }
  0x1b   : > { %v201_v19 = vsub.f32 %v199_v13, %v200_v16  ;;  %v209_v22 = vand.u32 4294901760, %v208_v17  ;;  %1156 = vmatprep.subr.mxu0 %v199_v13 }
  0x1c   : > { %57 = vrot.lane.b32.xlu0 %v52_v18, %s1277_s15  ;;  %65 = vrot.lane.b32.xlu1 %v52_v18, %s1278_s16 }
  0x1d   : > { %v202_v21 = vand.u32 4294901760, %v201_v19 }
  0x1f   : > { %1149 = vmatprep.subr.mxu1 %v202_v21 }
  0x20   : > { %1150 = vmatpush3.msra.mxu1 %v202_v21 }
  0x21   : > { %1151 = vmatprep.subr.mxu1 %v209_v22 }
  0x22   : > { %1152 = vmatpush3.msra.mxu1 %v209_v22 }
  0x23   : > { %1163 = vmatprep.subr.msk.mxu1 %vm78_vm3, %v1303_v9 }
  0x8a   : > { %v56_v23 = vpop.permute.xlu0 %55  ;;  %v64_v24 = vpop.permute.xlu1 %63 }
  0x8b   : > { %v61_v25 = vmax.f32 %v51_v15, %v56_v23 }
  0x8d   : > { %v69_v26 = vmax.f32 %v61_v25, %v64_v24 }
  0x8e   : > { %v58_v27 = vpop.permute.xlu0 %57  ;;  %v66_v28 = vpop.permute.xlu1 %65 }
  0x8f   : > { %v73_v29 = vsel %vm71_vm4, %v69_v26, 0  ;;  %v62_v30 = vmax.f32 %v52_v18, %v58_v27 }
  0x90   : > { %v149_v31 = vand.u32 4294901760, %v73_v29 }
  0x91   : > { %v70_v32 = vmax.f32 %v62_v30, %v66_v28 }
  0x92   : > { %v150_v33 = vsub.f32 %v73_v29, %v149_v31  ;;  %1153 = vmatprep.mubr.f32.mxu1 %v149_v31 }
  0x93   : > { %v76_v34 = vsel %vm71_vm4, %v70_v32, 0 }
  0x94   : > { %v159_v35 = vand.u32 4294901760, %v76_v34  ;;  %v151_v36 = vand.u32 4294901760, %v150_v33 }
  0x96   : > { %v160_v37 = vsub.f32 %v76_v34, %v159_v35  ;;  %1154 = vmatmul.mubr.f32.vlgmr.msra.gmra.mxu1 %v159_v35  ;;  %v152_v38 = vsub.f32 %v150_v33, %v151_v36 }
  0x97   : > { %1164 = vmatpush3.msk.msra.mxu1 %vm78_vm3, %v1303_v9  ;;  %1167 = vmatprep.mubr.f32.mxu1 %v151_v36 }
  0x98   : > { %1165 = vmatprep.subr.msk.mxu1 %vm1295_vm0, %v1279_v20  ;;  %v153_v39 = vand.u32 4294901760, %v152_v38  ;;  %v161_v40 = vand.u32 4294901760, %v160_v37 }
  0x99   : > { %1166 = vmatpush3.msk.msra.mxu1 %vm1295_vm0, %v1279_v20 }
  0x9a   : > { %1146 = vmatprep.mubr.f32.mxu0 %v153_v39  ;;  %1168 = vmatmul.mubr.f32.vlgmr.msra.gmra.mxu1 %v161_v40  ;;  %v162_v41 = vsub.f32 %v160_v37, %v161_v40 }
  0x9b   : > { %1177 = vmatprep.subr.msk.mxu1 %vm78_vm3, %v1303_v9  ;;  %1181 = vmatprep.mubr.f32.mxu1 %v149_v31 }
  0x9c   : > { %1178 = vmatpush3.msk.msra.mxu1 %vm78_vm3, %v1303_v9  ;;  %v163_v42 = vand.u32 4294901760, %v162_v41 }
  0x9d   : > { %1179 = vmatprep.subr.msk.mxu1 %vm1295_vm0, %v1279_v20 }
  0x9e   : > { %1180 = vmatpush3.msk.msra.mxu1 %vm1295_vm0, %v1279_v20  ;;  %1147 = vmatmul.mubr.f32.vlgmr.msra.gmra.mxu0 %v163_v42 }
  0x9f   : > { %1182 = vmatmul.mubr.f32.vlgmr.msra.gmra.mxu1 %v159_v35  ;;  %1157 = vmatpush3.msra.mxu0 %v199_v13 }
  0xa0   : > { %1160 = vmatprep.mubr.f32.mxu0 %v150_v33  ;;  %1158 = vmatprep.subr.mxu0 %v1314_v11 }
  0xa1   : > { %1159 = vmatpush3.msra.mxu0 %v1314_v11  ;;  %1191 = vmatprep.subr.mxu1 %v1280_v43 }
  0xa2   : > { %1161 = vmatmul.mubr.f32.vlgmr.msra.gmra.mxu0 %v160_v37  ;;  %1170 = vmatprep.subr.mxu0 %v200_v16 }
  0xa3   : > { %1171 = vmatpush3.msra.mxu0 %v200_v16  ;;  %1174 = vmatprep.mubr.f32.mxu0 %v149_v31  ;;  %v679_v16 = vsub.f32 %v677_v62, %v678_v5 }
  0xa4   : > { %1172 = vmatprep.subr.mxu0 %v1322_v14  ;;  %1195 = vmatprep.mubr.msk.f32.mxu1 %vm1281_vm5, %v1280_v43 }
  0xa5   : > { %1173 = vmatpush3.msra.mxu0 %v1322_v14  ;;  %v680_v22 = vand.u32 4294901760, %v679_v16 }
  0xa6   : > { %1175 = vmatmul.mubr.f32.vlgmr.msra.gmra.mxu0 %v159_v35  ;;  %1184 = vmatprep.subr.mxu0 %v1280_v43 }
  0xa7   : > { %1188 = vmatprep.mubr.msk.f32.mxu0 %vm1281_vm5, %v1280_v43 }
 0x156   : > { %v1155_v44 = vpop.f32.mrf.mxu1 }
 0x158   : > { %v246_v45 = vpop.f32.mrf.mxu1 }
 0x15a   : > { %v1169_v46 = vpop.f32.mrf.mxu1 }
 0x15c   : > { %v410_v50 = vpop.f32.mrf.mxu1 }
 0x15e   : > { %v1148_v47 = vpop.f32.mrf.mxu0 }
 0x15f   : > { %v253_v49 = vadd.f32 %v1155_v44, %v1148_v47  ;;  %v1183_v58 = vpop.f32.mrf.mxu1 }
 0x160   : > { %v155_v48 = vpop.f32.mrf.mxu0 }
 0x161   : > { %v247_v52 = vadd.f32 %v246_v45, %v155_v48  ;;  %v574_v2 = vpop.f32.mrf.mxu1 }
 0x162   : > { %v1162_v51 = vpop.f32.mrf.mxu0 }
 0x163   : > { %v336_v53 = vadd.f32 %v1162_v51, %v253_v49 }
 0x164   : > { %v328_v54 = vpop.f32.mrf.mxu0 }
 0x165   : > { %v329_v56 = vadd.f32 %v328_v54, %v247_v52  ;;  %v419_v57 = vadd.f32 %v1169_v46, %v336_v53 }
 0x166   : > { %v1176_v59 = vpop.f32.mrf.mxu0 }
 0x167   : > { %v502_v60 = vadd.f32 %v1176_v59, %v419_v57  ;;  %v411_v61 = vadd.f32 %v410_v50, %v329_v56 }
 0x168   : > { %v495_v63 = vpop.f32.mrf.mxu0 }
 0x169   : > { %v581_v0 = vadd.f32 %v1183_v58, %v502_v60  ;;  %v496_v1 = vadd.f32 %v495_v63, %v411_v61 }
 0x16b   : > { %v590_v3 = vrot.slane %v581_v0, 1  ;;  %v575_v4 = vadd.f32 %v574_v2, %v496_v1  ;;  %v597_v11 = vrot.slane %v581_v0, 2 }
 0x16d   : > { %v595_v7 = vmax.f32 %v581_v0, %v590_v3  ;;  %v589_v12 = vrot.slane %v575_v4, 1  ;;  %v596_v13 = vrot.slane %v575_v4, 2 }
 0x16f   : > { %v602_v14 = vmax.f32 %v595_v7, %v597_v11  ;;  %v591_v15 = vsel %vm588_vm6, %v589_v12, %v590_v3  ;;  %v598_v18 = vsel %vm78_vm3, %v596_v13, %v597_v11 }
 0x170   : > { %v594_v17 = vmax.f32 %v575_v4, %v591_v15 }
 0x171   : > { %v607_v19 = vsel %vm78_vm3, %v602_v14, 0 }
 0x172   : > { %v601_v20 = vmax.f32 %v594_v17, %v598_v18  ;;  %v638_v21 = vand.u32 4294901760, %v607_v19 }
 0x174   : > { %1185 = vmatpush3.msra.mxu0 %v638_v21  ;;  %v641_v23 = vand.u32 4294901760, %v601_v20  ;;  %v716_v24 = vsub.f32 %v607_v19, %v638_v21 }
 0x175   : > { %1186 = vmatprep.subr.mxu0 %v1280_v43 }
 0x176   : > { %1187 = vmatpush3.msra.mxu0 %v641_v23  ;;  %v723_v25 = vsub.f32 %v601_v20, %v641_v23  ;;  %v717_v26 = vand.u32 4294901760, %v716_v24 }
 0x177   : > { %1198 = vmatprep.subr.mxu0 %v1280_v43  ;;  %1189 = vmatmul.mubr.f32.vlgmr.msra.gmra.mxu0 %v680_v22 }
 0x178   : > { %1199 = vmatpush3.msra.mxu0 %v716_v24  ;;  %1202 = vmatprep.mubr.msk.f32.mxu0 %vm1281_vm5, %v1280_v43  ;;  %v718_v27 = vsub.f32 %v716_v24, %v717_v26  ;;  %v724_v28 = vand.u32 4294901760, %v723_v25 }
 0x179   : > { %1200 = vmatprep.subr.mxu0 %v1280_v43 }
 0x17a   : > { %1201 = vmatpush3.msra.mxu0 %v723_v25  ;;  %v719_v29 = vand.u32 4294901760, %v718_v27  ;;  %v725_v30 = vsub.f32 %v723_v25, %v724_v28 }
 0x17b   : > { %1212 = vmatprep.subr.mxu0 %v1280_v43  ;;  %1203 = vmatmul.mubr.f32.vlgmr.msra.gmra.mxu0 %v677_v62 }
 0x17c   : > { %1192 = vmatpush3.msra.mxu1 %v719_v29  ;;  %1213 = vmatpush3.msra.mxu0 %v717_v26  ;;  %v726_v31 = vand.u32 4294901760, %v725_v30 }
 0x17d   : > { %1193 = vmatprep.subr.mxu1 %v1280_v43  ;;  %1214 = vmatprep.subr.mxu0 %v1280_v43 }
 0x17e   : > { %1194 = vmatpush3.msra.mxu1 %v726_v31  ;;  %1215 = vmatpush3.msra.mxu0 %v724_v28 }
 0x17f   : > { %1196 = vmatmul.mubr.msk.f32.vlgmr.msra.gmra.mxu1 %vm71_vm4, %v1305_v10  ;;  %1205 = vmatprep.subr.mxu1 %v1280_v43 }
 0x180   : > { %1206 = vmatpush3.msra.mxu1 %v638_v21  ;;  %1209 = vmatprep.mubr.msk.f32.mxu1 %vm1281_vm5, %v1280_v43 }
 0x181   : > { %1207 = vmatprep.subr.mxu1 %v1280_v43  ;;  %1216 = vmatprep.mubr.msk.f32.mxu0 %vm1281_vm5, %v1280_v43 }
 0x182   : > { %1208 = vmatpush3.msra.mxu1 %v641_v23  ;;  %1217 = vmatmul.mubr.msk.f32.vlgmr.msra.gmra.mxu0 %vm71_vm4, %v1305_v10 }
 0x183   : > { %1210 = vmatmul.mubr.f32.vlgmr.msra.gmra.mxu1 %v678_v5  ;;  %1219 = vmatprep.subr.mxu1 %v1280_v43 }
 0x184   : > { %1220 = vmatpush3.msra.mxu1 %v638_v21  ;;  %1223 = vmatprep.mubr.msk.f32.mxu1 %vm1281_vm5, %v1280_v43 }
 0x185   : > { %1221 = vmatprep.subr.mxu1 %v1280_v43 }
 0x186   : > { %1222 = vmatpush3.msra.mxu1 %v641_v23 }
 0x187   : > { %1224 = vmatmul.mubr.msk.f32.vlgmr.msra.gmra.mxu1 %vm71_vm4, %v1305_v10 }
 0x237   : > { %v682_v32 = vpop.f32.mrf.mxu0 }
 0x239   : > { %v1190_v33 = vpop.f32.mrf.mxu0 }
 0x23b   : > { %v839_v34 = vpop.f32.mrf.mxu0 }
 0x23d   : > { %v1204_v35 = vpop.f32.mrf.mxu0 }
 0x23f   : > { %v763_v36 = vpop.f32.mrf.mxu1 }
 0x240   : > { %v764_v37 = vadd.f32 %v763_v36, %v682_v32 }
 0x241   : > { %v1197_v38 = vpop.f32.mrf.mxu1 }
 0x242   : > { %v840_v39 = vadd.f32 %v839_v34, %v764_v37  ;;  %v991_v40 = vpop.f32.mrf.mxu0 }
 0x243   : > { %v914_v41 = vpop.f32.mrf.mxu1 }
 0x244   : > { %v915_v42 = vadd.f32 %v914_v41, %v840_v39  ;;  %v1218_v44 = vpop.f32.mrf.mxu0 }
 0x245   : > { %v1211_v45 = vpop.f32.mrf.mxu1 }
 0x246   : > { %v992_v46 = vadd.f32 %v991_v40, %v915_v42  ;;  %47 = sbr.rel (!%p45_p5) target bundleno = 21 (0x15), region = 37 }
 0x247   : > { %v1064_v43 = vpop.f32.mrf.mxu1 }
 0x248   : > { %v1065_v47 = vadd.f32 %v1064_v43, %v992_v46 }
 0x249   : > { %v1225_v48 = vpop.f32.mrf.mxu1 }
 0x24a   : > { %1071 = vst.msk [vmem:[%s1069_s20] sm:$0x1f] %vm1070_vm7, %v1065_v47 }
 0x24b   :  { %1076 = vsyncpa [#allocation3], 1 }

</bundles_post_ra>
